<compile_context>
chip_gen: v6e
topology: v6e:2x2x1
jax: 0.10.0
libtpu: 0.0.40
codegen_flags: <defaults>
</compile_context>

<pallas_src>
import functools

import jax
import jax.numpy as jnp
from jax.experimental import pallas as pl
from jax.experimental.pallas import tpu as pltpu


def _round_up(x, m):
    return ((x + m - 1) // m) * m


def _pick_tile(padded_dim, candidates=(512, 256, 128)):
    # padded_dim is always a multiple of 128, so this always returns.
    for c in candidates:
        if padded_dim % c == 0:
            return c
    return 128


def _patch_proj_kernel(x_ref, w_ref, b_ref, o_ref, acc_ref):
    # Tiled matmul + bias: grid = (rows, embed cols, K reduction).
    k = pl.program_id(2)

    @pl.when(k == 0)
    def _():
        acc_ref[...] = jnp.zeros_like(acc_ref)

    acc_ref[...] += jnp.dot(
        x_ref[...], w_ref[...], preferred_element_type=jnp.float32
    )

    @pl.when(k == pl.num_programs(2) - 1)
    def _():
        o_ref[...] = (acc_ref[...] + b_ref[...].astype(jnp.float32)).astype(o_ref.dtype)


@functools.partial(jax.jit, static_argnames=("tm_req",))
def patch_embed_pallas(x, w, b, *, tm_req=256):
    """PatchEmbed forward.

    x: (B, C, H, W)   image, channels-first (PyTorch layout)
    w: (E, C, P, P)   Conv2d weight with kernel_size == stride == P
    b: (E,)           Conv2d bias
    returns (B, num_patches, E)
    """
    B, C, H, W = x.shape
    E, Cw, P, Pw = w.shape
    assert C == Cw and P == Pw, "weight/input channel or patch mismatch"
    assert H % P == 0 and W % P == 0, "img size must be divisible by patch size"
    GH, GW = H // P, W // P
    N = GH * GW
    M = B * N
    K = C * P * P

    # im2col for non-overlapping patches (layout plumbing only):
    # (B, C, H, W) -> (B, GH, GW, C, P, P) -> (M, K); K flattened as (c, ph, pw)
    # to match PyTorch's Conv2d weight flattening order.
    patches = x.reshape(B, C, GH, P, GW, P).transpose(0, 2, 4, 1, 3, 5).reshape(M, K)
    w2d = w.reshape(E, K).T          # (K, E)
    b2d = b.reshape(1, E)

    # Pad to TPU-friendly multiples: lane-dense output, (8,128)-aligned tiles.
    K_pad = _round_up(K, 128)
    E_pad = _round_up(E, 128)
    tm = tm_req if M >= tm_req else _round_up(M, 8)
    M_pad = _round_up(M, tm)
    tk = _pick_tile(K_pad)
    tn = _pick_tile(E_pad)

    patches = jnp.pad(patches, ((0, M_pad - M), (0, K_pad - K)))
    w2d = jnp.pad(w2d, ((0, K_pad - K), (0, E_pad - E)))
    b2d = jnp.pad(b2d, ((0, 0), (0, E_pad - E)))

    grid = (M_pad // tm, E_pad // tn, K_pad // tk)
    out = pl.pallas_call(
        _patch_proj_kernel,
        out_shape=jax.ShapeDtypeStruct((M_pad, E_pad), x.dtype),
        grid_spec=pltpu.PrefetchScalarGridSpec(
            num_scalar_prefetch=0,
            grid=grid,
            in_specs=[
                pl.BlockSpec((tm, tk), lambda i, j, k: (i, k)),   # patch rows
                pl.BlockSpec((tk, tn), lambda i, j, k: (k, j)),   # weight tile
                pl.BlockSpec((1, tn), lambda i, j, k: (0, j)),    # bias tile
            ],
            out_specs=pl.BlockSpec((tm, tn), lambda i, j, k: (i, j)),
            scratch_shapes=[pltpu.VMEM((tm, tn), jnp.float32)],
        ),
        compiler_params=pltpu.CompilerParams(
            dimension_semantics=("parallel", "parallel", "arbitrary"),
            vmem_limit_bytes=64 * 1024 * 1024,
        ),
    )(patches, w2d, b2d)

    out = out[:M, :E].reshape(B, N, E)
    # norm_layer=None in the reference module -> nn.Identity(): nothing to apply.
    return out


if __name__ == "__main__":
    # Small shapes consistent with the module: 2 images, 3 channels, 16x16
    # pixels, 4x4 patches (-> 16 patches/image), embed_dim=128 (lane-dense).
    B, C, H, W = 2, 3, 16, 16
    P, E = 4, 128

    key = jax.random.PRNGKey(0)
    kx, kw, kb = jax.random.split(key, 3)
    x = jax.random.normal(kx, (B, C, H, W), jnp.float32)
    fan_in = C * P * P
    lim = 1.0 / (fan_in ** 0.5)          # mimic nn.Conv2d default init
    w = jax.random.uniform(kw, (E, C, P, P), jnp.float32, -lim, lim)
    b = jax.random.uniform(kb, (E,), jnp.float32, -lim, lim)

    y = patch_embed_pallas(x, w, b)
    y = jax.block_until_ready(y)

    # Pure-JAX reference: the actual conv, then flatten(2).transpose(1, 2).
    ref = jax.lax.conv_general_dilated(
        x, w, window_strides=(P, P), padding="VALID",
        dimension_numbers=("NCHW", "OIHW", "NCHW"))
    ref = ref + b.reshape(1, E, 1, 1)
    GH, GW = H // P, W // P
    ref = ref.reshape(B, E, GH * GW).transpose(0, 2, 1)

    assert y.shape == (B, GH * GW, E), f"bad shape {y.shape}"
    assert jnp.allclose(y, ref, atol=1e-2, rtol=1e-2), "mismatch vs conv reference"

    print("KERNEL_OK")
</pallas_src>

<mosaic_0001>
module attributes {stable_mosaic.version = 11 : i64} {
  func.func @_patch_proj_kernel(%arg0: i32, %arg1: i32, %arg2: i32, %arg3: memref<32x128xf32, #tpu.memory_space<vmem>>, %arg4: memref<128x128xf32, #tpu.memory_space<vmem>>, %arg5: memref<1x128xf32, #tpu.memory_space<vmem>>, %arg6: memref<32x128xf32, #tpu.memory_space<vmem>>, %arg7: memref<32x128xf32, #tpu.memory_space<vmem>>) attributes {dimension_semantics = [#tpu.dimension_semantics<parallel>, #tpu.dimension_semantics<parallel>, #tpu.dimension_semantics<arbitrary>], iteration_bounds = array<i64: 1, 1, 1>, scalar_prefetch = 0 : i64, scratch_operands = 1 : i64, tpu.core_type = #tpu.core_type<tc>, window_params = [{transform_indices = @transform_0, window_bounds = array<i64: 32, 128>}, {transform_indices = @transform_1, window_bounds = array<i64: 128, 128>}, {transform_indices = @transform_2, window_bounds = array<i64: 1, 128>}, {transform_indices = @transform_3, window_bounds = array<i64: 32, 128>}]} {
    %c0_i32 = arith.constant 0 : i32
    %0 = arith.cmpi eq, %arg2, %c0_i32 : i32
    %1 = arith.extui %0 : i1 to i32
    %c0_i32_0 = arith.constant 0 : i32
    %2 = arith.cmpi ne, %1, %c0_i32_0 : i32
    scf.if %2 {
      %cst_10 = arith.constant 0.000000e+00 : f32
      %12 = vector.broadcast %cst_10 : f32 to vector<32x128xf32>
      %c0_11 = arith.constant 0 : index
      %c0_12 = arith.constant 0 : index
      %13 = vector.load %arg7[%c0_11, %c0_12] : memref<32x128xf32, #tpu.memory_space<vmem>>, vector<32x128xf32>
      tpu.vector_store %arg7[%c0_11, %c0_12], %12 {strides = array<i32>} : memref<32x128xf32, #tpu.memory_space<vmem>>, vector<32x128xf32>,
    } else {
    }
    %c0 = arith.constant 0 : index
    %c0_1 = arith.constant 0 : index
    %3 = vector.load %arg7[%c0, %c0_1] : memref<32x128xf32, #tpu.memory_space<vmem>>, vector<32x128xf32>
    %c0_2 = arith.constant 0 : index
    %c0_3 = arith.constant 0 : index
    %4 = vector.load %arg3[%c0_2, %c0_3] : memref<32x128xf32, #tpu.memory_space<vmem>>, vector<32x128xf32>
    %c0_4 = arith.constant 0 : index
    %c0_5 = arith.constant 0 : index
    %5 = vector.load %arg4[%c0_4, %c0_5] : memref<128x128xf32, #tpu.memory_space<vmem>>, vector<128x128xf32>
    %cst = arith.constant dense<0.000000e+00> : vector<32x128xf32>
    %6 = tpu.matmul %4, %5, %cst {dimension_numbers = #tpu.dot_dimension_numbers<[1], [0], [0], [1], [0, 0, 1, 1], [], []>} : vector<32x128xf32>, vector<128x128xf32>, vector<32x128xf32> -> vector<32x128xf32>
    %7 = arith.addf %3, %6 : vector<32x128xf32>
    %c0_6 = arith.constant 0 : index
    %c0_7 = arith.constant 0 : index
    %8 = vector.load %arg7[%c0_6, %c0_7] : memref<32x128xf32, #tpu.memory_space<vmem>>, vector<32x128xf32>
    tpu.vector_store %arg7[%c0_6, %c0_7], %7 {strides = array<i32>} : memref<32x128xf32, #tpu.memory_space<vmem>>, vector<32x128xf32>,
    %c0_i32_8 = arith.constant 0 : i32
    %9 = arith.cmpi eq, %arg2, %c0_i32_8 : i32
    %10 = arith.extui %9 : i1 to i32
    %c0_i32_9 = arith.constant 0 : i32
    %11 = arith.cmpi ne, %10, %c0_i32_9 : i32
    scf.if %11 {
      %c0_10 = arith.constant 0 : index
      %c0_11 = arith.constant 0 : index
      %12 = vector.load %arg7[%c0_10, %c0_11] : memref<32x128xf32, #tpu.memory_space<vmem>>, vector<32x128xf32>
      %c0_12 = arith.constant 0 : index
      %c0_13 = arith.constant 0 : index
      %13 = vector.load %arg5[%c0_12, %c0_13] : memref<1x128xf32, #tpu.memory_space<vmem>>, vector<1x128xf32>
      %14 = vector.broadcast %13 : vector<1x128xf32> to vector<32x128xf32>
      %15 = arith.addf %12, %14 : vector<32x128xf32>
      %c0_14 = arith.constant 0 : index
      %c0_15 = arith.constant 0 : index
      %16 = vector.load %arg6[%c0_14, %c0_15] : memref<32x128xf32, #tpu.memory_space<vmem>>, vector<32x128xf32>
      tpu.vector_store %arg6[%c0_14, %c0_15], %15 {strides = array<i32>} : memref<32x128xf32, #tpu.memory_space<vmem>>, vector<32x128xf32>,
    } else {
    }
    return
  }
  func.func @transform_0(%arg0: i32, %arg1: i32, %arg2: i32) -> (i32, i32) {
    %c0_i32 = arith.constant 0 : i32
    return %arg0, %arg2 : i32, i32
  }
  func.func @transform_1(%arg0: i32, %arg1: i32, %arg2: i32) -> (i32, i32) {
    %c0_i32 = arith.constant 0 : i32
    return %arg2, %arg1 : i32, i32
  }
  func.func @transform_2(%arg0: i32, %arg1: i32, %arg2: i32) -> (i32, i32) {
    %c0_i32 = arith.constant 0 : i32
    %c0_i32_0 = arith.constant 0 : i32
    return %c0_i32, %arg1 : i32, i32
  }
  func.func @transform_3(%arg0: i32, %arg1: i32, %arg2: i32) -> (i32, i32) {
    %c0_i32 = arith.constant 0 : i32
    return %arg0, %arg1 : i32, i32
  }
}

</mosaic_0001>

<bundles_post_ra>
// kernel: patch_embed_pallas.1
= control target key start
LH: loop header
LB: loop body
LE: loop exit
PB: predicated region body
PF: predicated region fallthrough
CT: control target
= control target key end

     0   :  { %s383_s0 = inlined_call_operand.vmem [shape: f32[32,128], index: 0, kind: input, shape index: {}]   ;;  %s384_s1 = inlined_call_operand.vmem [shape: f32[128,128], index: 1, kind: input, shape index: {}]   ;;  %s385_s2 = inlined_call_operand.vmem [shape: f32[1,128], index: 2, kind: input, shape index: {}]   ;;  %s386_s3 = inlined_call_operand.hbm [shape: f32[32,128], index: 3, kind: output, shape index: {}]  }
   0x1   :  { %v46_v0 = vld [vmem:[%s384_s1 + $0x78] sm:$0xff]  ;;  %v45_v1 = vld [vmem:[%s384_s1 + $0x70] sm:$0xff]  ;;  %v44_v2 = vld [vmem:[%s384_s1 + $0x68] sm:$0xff] }
   0x2   :  { %199 = vmatprep.subr.mxu0 %v46_v0  ;;  %237 = vmatprep.subr.mxu1 %v46_v0  ;;  %v43_v3 = vld [vmem:[%s384_s1 + $0x60] sm:$0xff]  ;;  %v42_v4 = vld [vmem:[%s384_s1 + $0x58] sm:$0xff] }
   0x3   :  { %200 = vmatpush3.msra.mxu0 %v46_v0  ;;  %253 = vmatpush3.msra.mxu1 %v46_v0 }
   0x4   :  { %201 = vmatprep.subr.mxu0 %v45_v1  ;;  %238 = vmatprep.subr.mxu1 %v45_v1 }
   0x5   :  { %202 = vmatpush3.msra.mxu0 %v45_v1  ;;  %254 = vmatpush3.msra.mxu1 %v45_v1 }
   0x6   :  { %203 = vmatprep.subr.mxu0 %v44_v2  ;;  %239 = vmatprep.subr.mxu1 %v44_v2 }
   0x7   :  { %204 = vmatpush3.msra.mxu0 %v44_v2  ;;  %255 = vmatpush3.msra.mxu1 %v44_v2 }
   0x8   :  { %8 = vsyncpa [#allocation4], 0  ;;  %205 = vmatprep.subr.mxu0 %v43_v3  ;;  %240 = vmatprep.subr.mxu1 %v43_v3  ;;  %v41_v5 = vld [vmem:[%s384_s1 + $0x50] sm:$0xff]  ;;  %v40_v6 = vld [vmem:[%s384_s1 + $0x48] sm:$0xff]  ;;  %s294_s26 = smov [#allocation3]  }
   0x9   :  { %206 = vmatpush3.msra.mxu0 %v43_v3  ;;  %256 = vmatpush3.msra.mxu1 %v43_v3  ;;  %v39_v7 = vld [vmem:[%s384_s1 + $0x40] sm:$0xff]  ;;  %v38_v8 = vld [vmem:[%s384_s1 + $0x38] sm:$0xff]  ;;  %v37_v9 = vld [vmem:[%s384_s1 + $0x30] sm:$0xff]  ;;  %s167_s27 = sshll.u32 %s294_s26, 4  ;;  %s168_s27 = int_to_ptr.vmem [resolvable:$true] %s167_s27 }
   0xa   :  { %207 = vmatprep.subr.mxu0 %v42_v4  ;;  %241 = vmatprep.subr.mxu1 %v42_v4  ;;  %v36_v10 = vld [vmem:[%s384_s1 + $0x28] sm:$0xff]  ;;  %v35_v11 = vld [vmem:[%s384_s1 + $0x20] sm:$0xff]  ;;  %v34_v12 = vld [vmem:[%s384_s1 + $0x18] sm:$0xff]  ;;  %p277_p1 = scmp.lt.s32.totalorder %s168_s27, %s168_s27 }
   0xb   :  { %208 = vmatpush3.msra.mxu0 %v42_v4  ;;  %257 = vmatpush3.msra.mxu1 %v42_v4  ;;  %v33_v13 = vld [vmem:[%s384_s1 + $0x10] sm:$0xff]  ;;  %v32_v14 = vld [vmem:[%s384_s1 + $0x8] sm:$0xff]  ;;  %v31_v15 = vld [vmem:[%s384_s1] sm:$0xff] }
   0xc   :  { %209 = vmatprep.subr.mxu0 %v41_v5  ;;  %242 = vmatprep.subr.mxu1 %v41_v5  ;;  %v27_v16 = vld [vmem:[%s383_s0] sm:$0xff]  ;;  %v29_v17 = vld [vmem:[%s383_s0 + $0x10] sm:$0xff]  ;;  %v28_v18 = vld [vmem:[%s383_s0 + $0x8] sm:$0xff] }
   0xd   :  { %210 = vmatpush3.msra.mxu0 %v41_v5  ;;  %258 = vmatpush3.msra.mxu1 %v41_v5  ;;  %v30_v19 = vld [vmem:[%s383_s0 + $0x18] sm:$0xff]  ;;  %v178_v20 = vld [vmem:[%s385_s2] ss:$0 sm:$0xff]  ;;  %s272_s0 = scalar_lea.vmem %s168_s27, 512 }
   0xe   :  { %211 = vmatprep.subr.mxu0 %v40_v6  ;;  %243 = vmatprep.subr.mxu1 %v40_v6  ;;  %p273_p0 = scmp.ne.s32.totalorder %s168_s27, %s272_s0  ;;  %p278_p2 = scmp.lt.s32.totalorder %s272_s0, %s272_s0 }
   0xf   :  { %212 = vmatpush3.msra.mxu0 %v40_v6  ;;  %259 = vmatpush3.msra.mxu1 %v40_v6 }
  0x10   :  { %213 = vmatprep.subr.mxu0 %v39_v7  ;;  %244 = vmatprep.subr.mxu1 %v39_v7  ;;  %p279_p3 = por %p278_p2, %p277_p1 }
  0x11   :  { %214 = vmatpush3.msra.mxu0 %v39_v7  ;;  %260 = vmatpush3.msra.mxu1 %v39_v7 }
  0x12   :  { %215 = vmatprep.subr.mxu0 %v38_v8  ;;  %245 = vmatprep.subr.mxu1 %v38_v8  ;;  %p280_p4 = pnand %p279_p3, %p273_p0 }
  0x13   :  { %216 = vmatpush3.msra.mxu0 %v38_v8  ;;  %261 = vmatpush3.msra.mxu1 %v38_v8 }
  0x14   :  { %217 = vmatprep.subr.mxu0 %v37_v9  ;;  %246 = vmatprep.subr.mxu1 %v37_v9 }
  0x15   :  { %218 = vmatpush3.msra.mxu0 %v37_v9  ;;  %262 = vmatpush3.msra.mxu1 %v37_v9 }
  0x16   :  { %219 = vmatprep.subr.mxu0 %v36_v10  ;;  %247 = vmatprep.subr.mxu1 %v36_v10 }
  0x17   :  { %220 = vmatpush3.msra.mxu0 %v36_v10  ;;  %263 = vmatpush3.msra.mxu1 %v36_v10 }
  0x18   :  { %221 = vmatprep.subr.mxu0 %v35_v11  ;;  %248 = vmatprep.subr.mxu1 %v35_v11 }
  0x19   :  { %222 = vmatpush3.msra.mxu0 %v35_v11  ;;  %264 = vmatpush3.msra.mxu1 %v35_v11 }
  0x1a   :  { %223 = vmatprep.subr.mxu0 %v34_v12  ;;  %249 = vmatprep.subr.mxu1 %v34_v12 }
  0x1b   :  { %224 = vmatpush3.msra.mxu0 %v34_v12  ;;  %265 = vmatpush3.msra.mxu1 %v34_v12 }
  0x1c   :  { %225 = vmatprep.subr.mxu0 %v33_v13  ;;  %250 = vmatprep.subr.mxu1 %v33_v13 }
  0x1d   :  { %226 = vmatpush3.msra.mxu0 %v33_v13  ;;  %266 = vmatpush3.msra.mxu1 %v33_v13 }
  0x1e   :  { %227 = vmatprep.subr.mxu0 %v32_v14  ;;  %251 = vmatprep.subr.mxu1 %v32_v14 }
  0x1f   :  { %228 = vmatpush3.msra.mxu0 %v32_v14  ;;  %267 = vmatpush3.msra.mxu1 %v32_v14 }
  0x20   :  { %229 = vmatprep.subr.mxu0 %v31_v15  ;;  %252 = vmatprep.subr.mxu1 %v31_v15 }
  0x21   :  { %230 = vmatpush3.msra.mxu0 %v31_v15  ;;  %268 = vmatpush3.msra.mxu1 %v31_v15 }
  0x22   :  { %231 = vmatprep.mubr.f32.mxu0 %v27_v16  ;;  %234 = vmatprep.mubr.f32.mxu1 %v29_v17 }
  0x23   :  { %232 = vmatmul.mubr.f32.vlgmr.msra.gmra.mxu0 %v28_v18  ;;  %235 = vmatmul.mubr.f32.vlgmr.msra.gmra.mxu1 %v30_v19 }
  0xe3   :  { %v233_v21 = vpop.f32.mrf.mxu0  ;;  %v236_v22 = vpop.f32.mrf.mxu1 }
  0xe4   :  { %v155_v23 = vadd.f32 %v233_v21, %v178_v20  ;;  %v157_v24 = vadd.f32 %v236_v22, %v178_v20 }
  0xe5   :  { %v113_v25 = vpop.f32.mrf.mxu0  ;;  %v123_v26 = vpop.f32.mrf.mxu1 }
  0xe6   :  { %159 = vst [vmem:[#allocation3 + $0x8] sm:$0xff] %v155_v23  ;;  %161 = vst [vmem:[#allocation3 + $0x18] sm:$0xff] %v157_v24  ;;  %v154_v27 = vadd.f32 %v178_v20, %v113_v25  ;;  %v156_v28 = vadd.f32 %v178_v20, %v123_v26 }
  0xe8   :  { %158 = vst [vmem:[#allocation3] sm:$0xff] %v154_v27  ;;  %160 = vst [vmem:[#allocation3 + $0x10] sm:$0xff] %v156_v28 }
  0xe9   :  { %283 = shalt.err (!%p280_p4)
}
  0xea   :  { %s295_s2 = smov 128   ;;  %s296_s28 = smov 8  }
  0xeb   :  { %173 = dma.vmem_to_hbm [thread:$0]  %s168_s27, 512, %s386_s3, [#allocation4], %s295_s2, %s295_s2, %s296_s28  }
  0xec   :  { %292 = dma.done.wait [#allocation4], 512  }
  0xed   :  { %293 = vsyncadd [#allocation4], 4294966784 }
  0xee   :  { %177 = vsyncpa [#allocation4], 1 }

</bundles_post_ra>
